<compile_context>
chip_gen: v7x
topology: tpu7x:2x2x1
jax: 0.10.0
libtpu: 0.0.40
codegen_flags: <defaults>
</compile_context>

<pallas_src>
import functools

import jax
import jax.numpy as jnp
from jax.experimental import pallas as pl
from jax.experimental.pallas import tpu as pltpu


_VMEM_BUDGET = 40 * 1024 * 1024   # working-set budget (fits v7x's 64 MiB VMEM)
_VMEM_LIMIT = 48 * 1024 * 1024    # scoped VMEM limit handed to Mosaic


# ----------------------------------------------------------------------------
# Helpers
# ----------------------------------------------------------------------------
def _round_up(n, m):
    return ((n + m - 1) // m) * m


def _split_tile(n, cap, unit):
    """Split extent `n` into equal tiles.

    Returns (tile, n_pad) with: tile a multiple of `unit`, tile <= max(cap, unit),
    n_pad a multiple of tile, n_pad >= n, and padding minimized for the chosen
    number of tiles (never degrades to `unit`-wide tiles just for divisibility).
    """
    cap = max(cap, unit)
    n_u = _round_up(max(n, 1), unit)
    steps = -(-n_u // cap)
    tile = _round_up(-(-n_u // steps), unit)
    n_pad = _round_up(n_u, tile)
    return tile, n_pad


# ----------------------------------------------------------------------------
# Kernels
# ----------------------------------------------------------------------------
def _nlinear_shared_kernel(x_ref, w_ref, bias_ref, o_ref):
    """Shared-weight NLinear tile (seq_last already folded into W).

    x_ref:    [L, tn]    input tile (lanes = fused batch*channels OR channels)
    w_ref:    [tp, L]    folded shared weights
    bias_ref: [tp, 1]
    o_ref:    [tp, tn]
    """
    y = jnp.dot(w_ref[...], x_ref[...], preferred_element_type=jnp.float32)
    o_ref[...] = (y + bias_ref[...]).astype(o_ref.dtype)


def _nlinear_individual_kernel(x_ref, w_ref, bias_ref, o_ref, *, l_chunk):
    """Per-channel NLinear tile (seq_last already folded into W).

    x_ref:    [Lp, tc]      one batch element, channels on lanes
    w_ref:    [tp, Lp, tc]  per-channel weights, channels on lanes
    bias_ref: [tp, tc]
    o_ref:    [tp, tc]
    """
    tp, lp, tc = w_ref.shape
    n_chunks = lp // l_chunk

    if n_chunks == 1:
        x = x_ref[...].astype(jnp.float32)
        w = w_ref[...].astype(jnp.float32)
        acc = jnp.sum(w * x[None, :, :], axis=1)                     # [tp, tc]
    else:
        # Chunked lane-dense VPU multiply-reduce over L: only a
        # [tp, l_chunk, tc] temporary is live per step.
        def body(i, acc):
            l0 = pl.multiple_of(i * l_chunk, l_chunk)
            xc = x_ref[pl.ds(l0, l_chunk), :].astype(jnp.float32)    # [lc, tc]
            wc = w_ref[:, pl.ds(l0, l_chunk), :].astype(jnp.float32)  # [tp, lc, tc]
            return acc + jnp.sum(wc * xc[None, :, :], axis=1)

        unroll = n_chunks if n_chunks <= 8 else 4
        acc = jax.lax.fori_loop(0, n_chunks, body,
                                jnp.zeros((tp, tc), jnp.float32),
                                unroll=unroll)

    o_ref[...] = (acc + bias_ref[...].astype(jnp.float32)).astype(o_ref.dtype)


# ----------------------------------------------------------------------------
# Shared-weight wrappers
# ----------------------------------------------------------------------------
def _nlinear_shared_fused(x, w_folded, bias, *, pred_len):
    """Shared path for small channel counts: fuse batch*channels on lanes."""
    B, L, C = x.shape
    P = pred_len
    out_dtype = x.dtype

    xb = jnp.dtype(x.dtype).itemsize
    wb = jnp.dtype(w_folded.dtype).itemsize

    N = B * C
    tn, N_pad = _split_tile(N, cap=1024, unit=128)
    P8 = _round_up(P, 8)
    # Keep the double-buffered working set within a v7x-safe budget.
    while tn > 128 and 2 * (L * tn * xb + P8 * L * wb + P8 * tn * xb) > _VMEM_BUDGET:
        tn -= 128
    N_pad = _round_up(N, tn)
    ngrid = N_pad // tn

    # Guarantee >= 2 grid steps on a parallel axis (v7x has 2 TensorCores).
    if ngrid >= 2 or P8 < 16:
        tp, P_pad = P8, P8
    else:
        P_pad = _round_up(P8, 16)
        tp = P_pad // 2

    # [B, L, C] -> [L, B*C] (+pad): one fused copy pass in XLA each way.
    x_f = jnp.transpose(x, (1, 0, 2)).reshape(L, N)
    x_f = jnp.pad(x_f, ((0, 0), (0, N_pad - N)))
    w_p = jnp.pad(w_folded, ((0, P_pad - P), (0, 0)))
    bias_p = jnp.pad(bias.astype(jnp.float32), (0, P_pad - P))[:, None]

    grid = (P_pad // tp, ngrid)
    out = pl.pallas_call(
        _nlinear_shared_kernel,
        out_shape=jax.ShapeDtypeStruct((P_pad, N_pad), out_dtype),
        grid=grid,
        in_specs=[
            pl.BlockSpec((L, tn), lambda p, n: (0, n)),       # x tile (streamed)
            pl.BlockSpec((tp, L), lambda p, n: (p, 0)),       # folded W
            pl.BlockSpec((tp, 1), lambda p, n: (p, 0)),       # bias
        ],
        out_specs=pl.BlockSpec((tp, tn), lambda p, n: (p, n)),
        compiler_params=pltpu.CompilerParams(
            dimension_semantics=("parallel", "parallel"),
            vmem_limit_bytes=_VMEM_LIMIT,
        ),
    )(x_f, w_p, bias_p)

    out = out[:P, :N].reshape(P, B, C)
    return jnp.transpose(out, (1, 0, 2))


def _nlinear_shared_batched(x, w_folded, bias, *, pred_len):
    """Shared path for c_out >= 128: natural [B, L, C] layout, no transposes."""
    B, L, C = x.shape
    P = pred_len
    out_dtype = x.dtype

    P_pad = _round_up(P, 8)
    tc, C_pad = _split_tile(C, cap=512, unit=128)

    x_p = jnp.pad(x, ((0, 0), (0, 0), (0, C_pad - C)))
    w_p = jnp.pad(w_folded, ((0, P_pad - P), (0, 0)))
    bias_p = jnp.pad(bias.astype(jnp.float32), (0, P_pad - P))[:, None]

    grid = (B, C_pad // tc)
    out = pl.pallas_call(
        _nlinear_shared_kernel,
        out_shape=jax.ShapeDtypeStruct((B, P_pad, C_pad), out_dtype),
        grid=grid,
        in_specs=[
            pl.BlockSpec((None, L, tc), lambda b, c: (b, 0, c)),   # x (batch squeezed)
            pl.BlockSpec((P_pad, L), lambda b, c: (0, 0)),         # folded W (resident)
            pl.BlockSpec((P_pad, 1), lambda b, c: (0, 0)),         # bias (resident)
        ],
        out_specs=pl.BlockSpec((None, P_pad, tc), lambda b, c: (b, 0, c)),
        compiler_params=pltpu.CompilerParams(
            dimension_semantics=("parallel", "parallel"),
            vmem_limit_bytes=_VMEM_LIMIT,
        ),
    )(x_p, w_p, bias_p)
    return out[:, :P, :C]


def _nlinear_shared(x, weight, bias, *, pred_len, c_out):
    B, L, C = x.shape
    # Only the first c_out channels survive the final slice; compute only those.
    x = x[:, :, :c_out]

    # Fold seq_last algebraically into the weights:
    #   y = W @ (x - x_last) + b + x_last  ==  W' @ x + b,
    #   W'[:, L-1] = W[:, L-1] + (1 - rowsum(W)).
    w = weight.astype(jnp.float32)
    w = w.at[:, L - 1].add(1.0 - jnp.sum(w, axis=1))
    w = w.astype(x.dtype)   # keep MXU in the model dtype (f32 here, bf16-friendly)

    if c_out >= 128:
        return _nlinear_shared_batched(x, w, bias, pred_len=pred_len)
    return _nlinear_shared_fused(x, w, bias, pred_len=pred_len)


# ----------------------------------------------------------------------------
# Individual (per-channel) wrapper
# ----------------------------------------------------------------------------
def _nlinear_individual(x, weight, bias, *, pred_len, c_out):
    B, L, _ = x.shape
    P = pred_len
    out_dtype = x.dtype

    # Only the first c_out channels survive; compute only those.
    x = x[:, :, :c_out]
    weight = weight[:c_out]          # [C, P, L]
    bias = bias[:c_out]              # [C, P]
    C = c_out

    # Fold the seq_last correction into the last weight column (per channel).
    w_f32 = weight.astype(jnp.float32)
    corr = 1.0 - jnp.sum(w_f32, axis=-1)                           # [C, P]
    w_f32 = w_f32.at[:, :, L - 1].add(corr)
    w_plc = jnp.transpose(w_f32, (1, 2, 0)).astype(weight.dtype)   # [P, L, C]

    # L chunking bounds live temporaries in the kernel.
    if L <= 16:
        l_chunk, L_pad = L, L
    else:
        l_chunk = 16
        L_pad = _round_up(L, l_chunk)

    # Tile sizes from an explicit VMEM budget (double-buffered blocks).
    wbytes = jnp.dtype(w_plc.dtype).itemsize
    xbytes = jnp.dtype(x.dtype).itemsize

    def _vmem_use(tp_, tc_):
        return (2 * tp_ * L_pad * tc_ * wbytes        # weight block
                + 2 * L_pad * tc_ * xbytes            # x block
                + 2 * tp_ * tc_ * (4 + xbytes))       # bias + output blocks

    tc = min(256, _round_up(C, 128))
    tp = min(32, _round_up(P, 8))
    while tp > 8 and _vmem_use(tp, tc) > _VMEM_BUDGET:
        tp -= 8
    while tc > 128 and _vmem_use(tp, tc) > _VMEM_BUDGET:
        tc -= 128
    C_pad = _round_up(C, tc)
    P_pad = _round_up(P, tp)

    # Zero padding is exact: padded weight rows/lanes contribute nothing and
    # padded output rows/lanes are sliced off below.
    x_p = jnp.pad(x, ((0, 0), (0, L_pad - L), (0, C_pad - C)))
    w_p = jnp.pad(w_plc, ((0, P_pad - P), (0, L_pad - L), (0, C_pad - C)))
    bias_pc = jnp.pad(bias.T.astype(jnp.float32),
                      ((0, P_pad - P), (0, C_pad - C)))            # [Pp, Cp]

    # Batch innermost: the weight block index is constant across consecutive
    # steps, so W (the largest operand) is DMA'd from HBM once, not B times.
    grid = (P_pad // tp, C_pad // tc, B)
    kernel = functools.partial(_nlinear_individual_kernel, l_chunk=l_chunk)

    out = pl.pallas_call(
        kernel,
        out_shape=jax.ShapeDtypeStruct((B, P_pad, C_pad), out_dtype),
        grid=grid,
        in_specs=[
            pl.BlockSpec((None, L_pad, tc), lambda p, c, b: (b, 0, c)),  # x
            pl.BlockSpec((tp, L_pad, tc), lambda p, c, b: (p, 0, c)),    # W[p,l,c]
            pl.BlockSpec((tp, tc), lambda p, c, b: (p, c)),              # bias
        ],
        out_specs=pl.BlockSpec((None, tp, tc), lambda p, c, b: (b, p, c)),
        compiler_params=pltpu.CompilerParams(
            dimension_semantics=("parallel", "parallel", "arbitrary"),
            vmem_limit_bytes=_VMEM_LIMIT,
        ),
    )(x_p, w_p, bias_pc)

    return out[:, :P, :C]


# ----------------------------------------------------------------------------
# Public entry point + reference
# ----------------------------------------------------------------------------
@functools.partial(jax.jit, static_argnames=("pred_len", "c_out", "individual"))
def nlinear_forward(x, weight, bias, *, pred_len, c_out, individual):
    """NLinear forward.

    x:      [B, L, C]
    weight: [P, L]      if individual=False
            [C, P, L]   if individual=True
    bias:   [P]         if individual=False
            [C, P]      if individual=True
    returns [B, pred_len, c_out]
    """
    if individual:
        return _nlinear_individual(x, weight, bias, pred_len=pred_len, c_out=c_out)
    return _nlinear_shared(x, weight, bias, pred_len=pred_len, c_out=c_out)


def nlinear_reference(x, weight, bias, *, pred_len, c_out, individual):
    """Pure-JAX reference matching the PyTorch forward exactly."""
    seq_last = x[:, -1:, :]
    xz = x - seq_last
    if individual:
        y = jnp.einsum('blc,cpl->bpc', xz, weight) + bias.T[None, :, :]
    else:
        y = jnp.einsum('blc,pl->bpc', xz, weight) + bias[None, :, None]
    y = y + seq_last
    return y[:, :pred_len, :c_out]


# ----------------------------------------------------------------------------
# Main
# ----------------------------------------------------------------------------
def _make_params(key, seq_len, pred_len, enc_in, individual):
    kw, kb = jax.random.split(key)
    bound = 1.0 / (seq_len ** 0.5)   # nn.Linear-style init
    if individual:
        w = jax.random.uniform(kw, (enc_in, pred_len, seq_len), jnp.float32,
                               -bound, bound)
        b = jax.random.uniform(kb, (enc_in, pred_len), jnp.float32, -bound, bound)
    else:
        w = jax.random.uniform(kw, (pred_len, seq_len), jnp.float32, -bound, bound)
        b = jax.random.uniform(kb, (pred_len,), jnp.float32, -bound, bound)
    return w, b


if __name__ == "__main__":
    key = jax.random.PRNGKey(0)

    # Small configs exercising every code path (shared fused / shared fused with
    # P split / shared per-batch / individual single-chunk / individual chunked).
    cases = [
        dict(B=2, seq_len=8, pred_len=4, enc_in=4, c_out=3, individual=False),
        dict(B=2, seq_len=8, pred_len=4, enc_in=4, c_out=3, individual=True),
        dict(B=2, seq_len=8, pred_len=24, enc_in=4, c_out=3, individual=False),
        dict(B=2, seq_len=8, pred_len=4, enc_in=160, c_out=128, individual=False),
        dict(B=2, seq_len=40, pred_len=4, enc_in=4, c_out=3, individual=True),
    ]

    for i, cfg in enumerate(cases):
        k = jax.random.fold_in(key, i)
        kx, kp = jax.random.split(k)
        x = jax.random.normal(kx, (cfg["B"], cfg["seq_len"], cfg["enc_in"]),
                              dtype=jnp.float32)
        w, b = _make_params(kp, cfg["seq_len"], cfg["pred_len"], cfg["enc_in"],
                            cfg["individual"])

        out = nlinear_forward(x, w, b, pred_len=cfg["pred_len"],
                              c_out=cfg["c_out"], individual=cfg["individual"])
        jax.block_until_ready(out)

        ref = nlinear_reference(x, w, b, pred_len=cfg["pred_len"],
                                c_out=cfg["c_out"], individual=cfg["individual"])
        assert out.shape == (cfg["B"], cfg["pred_len"], cfg["c_out"]), (out.shape, cfg)
        assert jnp.allclose(out, ref, atol=1e-4, rtol=1e-4), cfg

    print("KERNEL_OK")
</pallas_src>

<mosaic_0001>
module attributes {stable_mosaic.version = 11 : i64} {
  func.func @_nlinear_shared_kernel(%arg0: i32, %arg1: i32, %arg2: memref<8x128xf32, #tpu.memory_space<vmem>>, %arg3: memref<8x8xf32, #tpu.memory_space<vmem>>, %arg4: memref<8x1xf32, #tpu.memory_space<vmem>>, %arg5: memref<8x128xf32, #tpu.memory_space<vmem>>) attributes {dimension_semantics = [#tpu.dimension_semantics<parallel>, #tpu.dimension_semantics<parallel>], iteration_bounds = array<i64: 1, 1>, scalar_prefetch = 0 : i64, scratch_operands = 0 : i64, tpu.core_type = #tpu.core_type<tc>, window_params = [{transform_indices = @transform_0, window_bounds = array<i64: 8, 128>}, {transform_indices = @transform_1, window_bounds = array<i64: 8, 8>}, {transform_indices = @transform_2, window_bounds = array<i64: 8, 1>}, {transform_indices = @transform_3, window_bounds = array<i64: 8, 128>}]} {
    %c0 = arith.constant 0 : index
    %c0_0 = arith.constant 0 : index
    %0 = vector.load %arg3[%c0, %c0_0] : memref<8x8xf32, #tpu.memory_space<vmem>>, vector<8x8xf32>
    %c0_1 = arith.constant 0 : index
    %c0_2 = arith.constant 0 : index
    %1 = vector.load %arg2[%c0_1, %c0_2] : memref<8x128xf32, #tpu.memory_space<vmem>>, vector<8x128xf32>
    %cst = arith.constant dense<0.000000e+00> : vector<8x128xf32>
    %2 = tpu.matmul %0, %1, %cst {dimension_numbers = #tpu.dot_dimension_numbers<[1], [0], [0], [1], [0, 0, 1, 1], [], []>} : vector<8x8xf32>, vector<8x128xf32>, vector<8x128xf32> -> vector<8x128xf32>
    %c0_3 = arith.constant 0 : index
    %c0_4 = arith.constant 0 : index
    %3 = vector.load %arg4[%c0_3, %c0_4] : memref<8x1xf32, #tpu.memory_space<vmem>>, vector<8x1xf32>
    %4 = vector.broadcast %3 : vector<8x1xf32> to vector<8x128xf32>
    %5 = arith.addf %2, %4 : vector<8x128xf32>
    %c0_5 = arith.constant 0 : index
    %c0_6 = arith.constant 0 : index
    %6 = vector.load %arg5[%c0_5, %c0_6] : memref<8x128xf32, #tpu.memory_space<vmem>>, vector<8x128xf32>
    tpu.vector_store %arg5[%c0_5, %c0_6], %5 {strides = array<i32>} : memref<8x128xf32, #tpu.memory_space<vmem>>, vector<8x128xf32>,
    return
  }
  func.func @transform_0(%arg0: i32, %arg1: i32) -> (i32, i32) {
    %c0_i32 = arith.constant 0 : i32
    %c0_i32_0 = arith.constant 0 : i32
    return %c0_i32, %arg1 : i32, i32
  }
  func.func @transform_1(%arg0: i32, %arg1: i32) -> (i32, i32) {
    %c0_i32 = arith.constant 0 : i32
    %c0_i32_0 = arith.constant 0 : i32
    return %arg0, %c0_i32 : i32, i32
  }
  func.func @transform_2(%arg0: i32, %arg1: i32) -> (i32, i32) {
    %c0_i32 = arith.constant 0 : i32
    %c0_i32_0 = arith.constant 0 : i32
    return %arg0, %c0_i32 : i32, i32
  }
  func.func @transform_3(%arg0: i32, %arg1: i32) -> (i32, i32) {
    %c0_i32 = arith.constant 0 : i32
    return %arg0, %arg1 : i32, i32
  }
}

</mosaic_0001>

<bundles_post_ra>
// kernel: nlinear_forward.1
= control target key start
LH: loop header
LB: loop body
LE: loop exit
PB: predicated region body
PF: predicated region fallthrough
CT: control target
= control target key end

     0   :  { %vm22_vm0 = vcmask 64512   ;;  %v113_v0 = vmov 0.0   ;;  %vm114_vm1 = vmmov 0   ;;  %v115_v4 = vmov 0   ;;  %s148_s0 = inlined_call_operand.vmem [shape: f32[8,128], index: 0, kind: input, shape index: {}]   ;;  %s149_s1 = inlined_call_operand.vmem [shape: f32[8,8], index: 1, kind: input, shape index: {}]   ;;  %s150_s2 = inlined_call_operand.vmem [shape: f32[8,1], index: 2, kind: input, shape index: {}]   ;;  %s151_s3 = inlined_call_operand.vmem [shape: f32[8,128], index: 3, kind: output, shape index: {}]  }
   0x1   :  { %104 = vmatprep.subr.mxu0 %v113_v0  ;;  %v15_v1 = vld [vmem:[%s148_s0] sm:$0xff]  ;;  %106 = vmatprep.mubr.msk.f32.mxu0 %vm114_vm1, %v113_v0 }
   0x2   :  { %v14_v2 = vld [vmem:[%s149_s1] sm:$0xff]  ;;  %105 = vmatpush3.msra.mxu0 %v15_v1  ;;  %112 = vset.pattern.permute.xlu0 %v115_v4 }
   0x3   :  { %v16_v3 = vld [vmem:[%s150_s2] sm:$0xff]  ;;  %107 = vmatmul.mubr.msk.f32.vlgmr.msra.gmra.mrb[0].mxu0 %vm22_vm0, %v14_v2 }
   0x4   :  { %19 = vperm.xlu0 %112, %v16_v3  }
  0x83   :  { %v20_v5 = vpop.permute.xlu0 %19 }
  0xd6   :  { %v92_v6 = vpop.f32.mrb[0].mxu0 }
  0xd7   :  { %v93_v7 = vadd.f32 %v92_v6, %v20_v5  ;;  %v108_v8 = vpop.f32.mrb[1].mxu0 }
  0xd9   :  { %96 = vst [vmem:[%s151_s3] sm:$0xff] %v93_v7 }

</bundles_post_ra>
